<compile_context>
chip_gen: v5e
topology: v5e:2x2
jax: 0.10.0
libtpu: 0.0.40
codegen_flags: <defaults>
</compile_context>

<pallas_src>
import functools

import jax
import jax.numpy as jnp
from jax import lax
from jax.experimental import pallas as pl
from jax.experimental.pallas import tpu as pltpu


# --------------------------------------------------------------------------
# Pallas kernel: per-(batch tile, hop) key addressing
# --------------------------------------------------------------------------
def _epnet_kernel(q_ref, ridx_ref, h_ref, t_ref, o_ref):
    # q_ref   : [TB, n_rel, D]  f32    q[b, r, :] = item[b, :] @ R[r]
    # ridx_ref: [1, TB, M]      int32  relation index per memory slot
    # h_ref   : [1, TB, M, D]          head entity embeddings (bf16 or f32)
    # t_ref   : [1, TB, M, D]          tail entity embeddings (bf16 or f32)
    # o_ref   : [1, TB, D]      f32    per-hop output
    q = q_ref[...]                                    # [TB, R, D] f32
    ridx = ridx_ref[0]                                # [TB, M]    int32
    h = h_ref[0].astype(jnp.float32)                  # [TB, M, D] f32 compute
    t = t_ref[0]                                      # [TB, M, D] storage dtype

    tb, m = ridx.shape
    n_rel = q.shape[1]

    # --- relation gather on the MXU --------------------------------------
    # q_sel[b, m, :] = q[b, ridx[b, m], :]
    r_iota = lax.broadcasted_iota(jnp.int32, (tb, m, n_rel), 2)
    one_hot = (ridx[:, :, None] == r_iota).astype(jnp.float32)        # [TB,M,R]
    q_sel = jnp.einsum("bmr,brd->bmd", one_hot, q,
                       preferred_element_type=jnp.float32)            # [TB,M,D]

    # probs[b, m] = item[b] . (R[ridx[b,m]] @ h[b,m]) = h[b,m] . q[b, ridx[b,m]]
    probs = jnp.sum(h * q_sel, axis=-1)                               # [TB, M]

    # --- softmax over the memory axis (dim=1 in PyTorch) -> lane reduce ---
    pmax = jnp.max(probs, axis=1, keepdims=True)
    pexp = jnp.exp(probs - pmax)
    denom = jnp.sum(pexp, axis=1, keepdims=True)
    pnorm = pexp * pl.reciprocal(denom, approx=True)                  # [TB, M]

    # --- o[b, :] = sum_m pnorm[b, m] * t[b, m, :]  (batched matvec, MXU) --
    pn = pnorm.astype(t.dtype)[:, None, :]                            # [TB,1,M]
    o = jnp.einsum("bum,bmd->bud", pn, t,
                   preferred_element_type=jnp.float32)                # [TB,1,D]
    o_ref[0] = o[:, 0, :].astype(o_ref.dtype)


# --------------------------------------------------------------------------
# Tile sizing: lane-padded, double-buffered VMEM estimate, per-chip budget
# --------------------------------------------------------------------------
def _round_up(x, m):
    return ((x + m - 1) // m) * m


def _vmem_capacity_bytes():
    try:
        return int(pltpu.get_tpu_info().vmem_capacity_bytes)
    except Exception:
        return 64 << 20        # v7x per-core VMEM: a safe lower bound everywhere


def _choose_batch_tile(B, M, D, n_rel, itemsize_ht, budget_bytes):
    """Largest lane-padded, double-buffered batch tile fitting the budget,
    capped so the 'parallel' batch axis has >=2 cells when B allows (v7x)."""
    lane = 128
    sub_ht = 16 if itemsize_ht == 2 else 8      # bf16 packs 16 rows / vreg

    def est(tb):
        q_b = tb * _round_up(n_rel, 8) * lane * 4
        ht_b = tb * _round_up(M, sub_ht) * lane * itemsize_ht
        ridx_b = _round_up(tb, 8) * _round_up(M, lane) * 4
        o_b = _round_up(tb, 8) * lane * 4
        return 2 * (q_b + 2 * ht_b + ridx_b + o_b)  # double-buffered streams

    if B > 8:
        tb_cap = _round_up((B + 1) // 2, 8)     # force >=2 batch tiles
    else:
        tb_cap = _round_up(max(B, 1), 8)

    tb = 8
    for cand in (4096, 2048, 1024, 512, 256, 128, 64, 32, 16, 8):
        if cand <= tb_cap and est(cand) <= budget_bytes:
            tb = cand
            break
    return tb, est(tb)


# --------------------------------------------------------------------------
# pallas_call wrapper
# --------------------------------------------------------------------------
def epnet_key_addressing(q_all, ridx_all, h_all, t_all):
    """q_all: [B, n_rel, D] f32; ridx_all: [HOP, B, M] int32;
    h_all / t_all: [HOP, B, M, D] (bf16 or f32)."""
    n_hop, B, M, D = h_all.shape
    n_rel = q_all.shape[1]
    itemsize_ht = jnp.dtype(h_all.dtype).itemsize

    vmem_cap = _vmem_capacity_bytes()
    budget = int(0.70 * vmem_cap)
    TB, est = _choose_batch_tile(B, M, D, n_rel, itemsize_ht, budget)

    # Pad the batch up to a multiple of TB (rows are independent; padded rows
    # produce finite garbage-free outputs and are sliced off below).
    Bp = _round_up(B, TB)
    if Bp != B:
        pad = Bp - B
        q_all = jnp.pad(q_all, ((0, pad), (0, 0), (0, 0)))
        ridx_all = jnp.pad(ridx_all, ((0, 0), (0, pad), (0, 0)))
        h_all = jnp.pad(h_all, ((0, 0), (0, pad), (0, 0), (0, 0)))
        t_all = jnp.pad(t_all, ((0, 0), (0, pad), (0, 0), (0, 0)))
    nbt = Bp // TB

    vmem_limit = int(min(int(0.80 * vmem_cap), max(est + (16 << 20), 48 << 20)))
    vmem_limit = max(vmem_limit, est + (4 << 20))      # never below actual use

    o_all = pl.pallas_call(
        _epnet_kernel,
        out_shape=jax.ShapeDtypeStruct((n_hop, Bp, D), jnp.float32),
        grid_spec=pltpu.PrefetchScalarGridSpec(
            num_scalar_prefetch=0,
            grid=(nbt, n_hop),
            in_specs=[
                pl.BlockSpec((TB, n_rel, D), lambda b, hop: (b, 0, 0)),       # q (hop-invariant)
                pl.BlockSpec((1, TB, M), lambda b, hop: (hop, b, 0)),         # relation ids
                pl.BlockSpec((1, TB, M, D), lambda b, hop: (hop, b, 0, 0)),   # h
                pl.BlockSpec((1, TB, M, D), lambda b, hop: (hop, b, 0, 0)),   # t
            ],
            out_specs=pl.BlockSpec((1, TB, D), lambda b, hop: (hop, b, 0)),   # o per hop
        ),
        compiler_params=pltpu.CompilerParams(
            dimension_semantics=("parallel", "parallel"),   # hops are independent
            vmem_limit_bytes=vmem_limit,
        ),
    )(q_all, ridx_all, h_all, t_all)
    return o_all[:, :B] if Bp != B else o_all


# --------------------------------------------------------------------------
# Full forward (embedding gathers + kernel + predict + BCE), mirroring EpNet_base
# --------------------------------------------------------------------------
def epnet_forward(params, items, labels, memories_h, memories_r, memories_t,
                  *, dim, n_memory, emb_storage_dtype=jnp.bfloat16):
    entity_emb = params["entity_emb"]            # [n_entity, D] f32
    relation_emb = params["relation_emb"]        # [n_relation, D*D] f32
    n_relation = relation_emb.shape[0]

    item_embeddings = entity_emb[items]                               # [B, D] f32

    # Cast the table BEFORE the gathers so the gather itself writes the compact
    # storage dtype (the h/t stream is the dominant HBM traffic end-to-end).
    entity_emb_st = entity_emb.astype(emb_storage_dtype)
    h_all = jnp.stack([entity_emb_st[m] for m in memories_h])         # [HOP,B,M,D]
    t_all = jnp.stack([entity_emb_st[m] for m in memories_t])         # [HOP,B,M,D]
    ridx_all = jnp.stack(memories_r).astype(jnp.int32)                # [HOP,B,M]
    # TODO(synk): relation ids could be stored as int8 (n_relation is tiny); at
    # these shapes they are ~3% of the kernel's HBM bytes, so int32 is kept.

    # Fused relation "gather": instead of materialising
    #   r_all = relation_emb[memories_r].reshape(HOP, B, M, D, D)
    # project the item embedding through every relation matrix once (tiny,
    # hop-invariant, exact f32); the kernel selects per memory via one-hot@MXU.
    rel3 = relation_emb.reshape(n_relation, dim, dim)
    q_all = jnp.einsum("bi,rij->brj", item_embeddings, rel3,
                       precision=lax.Precision.HIGHEST)               # [B,n_rel,D]

    # TODO(synk): rela_plus_emb_matrix and transform_matrix are declared in
    # EpNet_base.__init__ and gathered in forward(), but never used in its
    # compute path; they are omitted here.

    o_all = epnet_key_addressing(q_all, ridx_all, h_all, t_all)       # [HOP,B,D]

    # predict(): using_all_hops=True -> y = sum of all hop outputs,
    # scores = sigmoid((item * y).sum(dim=1)).  Kept in the wrapper: the score
    # is lane-narrow and tiny (avoids masked vst in the kernel).
    y = jnp.sum(o_all, axis=0)
    scores = jax.nn.sigmoid(jnp.sum(item_embeddings * y, axis=1))

    # BCE loss (nn.BCELoss semantics, with torch's -100 log clamp)
    labels_f = labels.astype(jnp.float32)
    log_s = jnp.clip(jnp.log(scores), -100.0, None)
    log_1ms = jnp.clip(jnp.log(1.0 - scores), -100.0, None)
    base_loss = -jnp.mean(labels_f * log_s + (1.0 - labels_f) * log_1ms)

    return dict(base_loss=base_loss, kge_loss=0.0, l2_loss=0.0,
                loss=base_loss, scores=scores, o_list=o_all)


# --------------------------------------------------------------------------
# Pure-JAX reference mirroring the PyTorch math directly
# --------------------------------------------------------------------------
def _reference(item_emb, relation_emb, memories_r, h_all, t_all, dim):
    n_hop, B, M, D = h_all.shape
    o_list = []
    for hop in range(n_hop):
        r = relation_emb[memories_r[hop]].reshape(B, M, dim, dim)
        Rh = jnp.einsum("bmij,bmj->bmi", r, h_all[hop],
                        precision=lax.Precision.HIGHEST)
        probs = jnp.einsum("bmi,bi->bm", Rh, item_emb,
                           precision=lax.Precision.HIGHEST)
        probs = jax.nn.softmax(probs, axis=1)
        o = jnp.sum(probs[:, :, None] * t_all[hop], axis=1)
        o_list.append(o)
    y = sum(o_list)
    scores = jax.nn.sigmoid(jnp.sum(item_emb * y, axis=1))
    return jnp.stack(o_list), scores


# --------------------------------------------------------------------------
# Main
# --------------------------------------------------------------------------
if __name__ == "__main__":
    # Small, module-consistent sizes
    n_entity, n_relation = 16, 4
    dim, n_hop, n_memory = 32, 2, 8
    batch = 2

    key = jax.random.PRNGKey(0)
    k_ent, k_rel, k_items, k_mem, _ = jax.random.split(key, 5)

    # Scaled-down random init keeps the softmax away from the hard-argmax
    # regime so the f32-vs-bf16/MXU compute paths stay well within tolerance.
    params = {
        "entity_emb": 0.3 * jax.random.normal(k_ent, (n_entity, dim), jnp.float32),
        "relation_emb": 0.15 * jax.random.normal(k_rel, (n_relation, dim * dim),
                                                 jnp.float32),
    }

    items = jax.random.randint(k_items, (batch,), 0, n_entity)
    labels = jnp.array([1, 0], dtype=jnp.int32)

    mk = jax.random.split(k_mem, 3 * n_hop)
    memories_h = [jax.random.randint(mk[i], (batch, n_memory), 0, n_entity)
                  for i in range(n_hop)]
    memories_t = [jax.random.randint(mk[n_hop + i], (batch, n_memory), 0, n_entity)
                  for i in range(n_hop)]
    memories_r = [jax.random.randint(mk[2 * n_hop + i], (batch, n_memory), 0, n_relation)
                  for i in range(n_hop)]

    fwd = functools.partial(epnet_forward, dim=dim, n_memory=n_memory)
    out = fwd(params, items, labels, memories_h, memories_r, memories_t)
    jax.block_until_ready(out["scores"])

    # Correctness vs. a pure-JAX reference fed the same bf16-rounded h/t inputs
    # (the storage-dtype rounding is a deliberate design choice, not an error).
    item_emb = params["entity_emb"][items]
    ent_bf = params["entity_emb"].astype(jnp.bfloat16).astype(jnp.float32)
    h_all_ref = jnp.stack([ent_bf[m] for m in memories_h])
    t_all_ref = jnp.stack([ent_bf[m] for m in memories_t])
    o_ref, scores_ref = _reference(item_emb, params["relation_emb"],
                                   memories_r, h_all_ref, t_all_ref, dim)

    assert jnp.allclose(out["o_list"], o_ref, atol=2e-2, rtol=2e-2)
    assert jnp.allclose(out["scores"], scores_ref, atol=2e-2, rtol=2e-2)
    assert bool(jnp.isfinite(out["loss"]))

    print("KERNEL_OK")
</pallas_src>

<mosaic_0001>
module attributes {stable_mosaic.version = 11 : i64} {
  func.func @_epnet_kernel(%arg0: i32, %arg1: i32, %arg2: memref<8x4x32xf32, #tpu.memory_space<vmem>>, %arg3: memref<1x8x8xi32, #tpu.memory_space<vmem>>, %arg4: memref<1x8x8x32xbf16, #tpu.memory_space<vmem>>, %arg5: memref<1x8x8x32xbf16, #tpu.memory_space<vmem>>, %arg6: memref<1x8x32xf32, #tpu.memory_space<vmem>>) attributes {dimension_semantics = [#tpu.dimension_semantics<parallel>, #tpu.dimension_semantics<parallel>], iteration_bounds = array<i64: 1, 2>, scalar_prefetch = 0 : i64, scratch_operands = 0 : i64, tpu.core_type = #tpu.core_type<tc>, window_params = [{transform_indices = @transform_0, window_bounds = array<i64: 8, 4, 32>}, {transform_indices = @transform_1, window_bounds = array<i64: 1, 8, 8>}, {transform_indices = @transform_2, window_bounds = array<i64: 1, 8, 8, 32>}, {transform_indices = @transform_3, window_bounds = array<i64: 1, 8, 8, 32>}, {transform_indices = @transform_4, window_bounds = array<i64: 1, 8, 32>}]} {
    %c0 = arith.constant 0 : index
    %c0_0 = arith.constant 0 : index
    %c0_1 = arith.constant 0 : index
    %0 = vector.load %arg2[%c0, %c0_0, %c0_1] : memref<8x4x32xf32, #tpu.memory_space<vmem>>, vector<8x4x32xf32>
    %c0_2 = arith.constant 0 : index
    %c0_3 = arith.constant 0 : index
    %c0_4 = arith.constant 0 : index
    %1 = vector.load %arg3[%c0_2, %c0_3, %c0_4] : memref<1x8x8xi32, #tpu.memory_space<vmem>>, vector<1x8x8xi32>
    %2 = vector.shape_cast %1 : vector<1x8x8xi32> to vector<8x8xi32>
    %c0_5 = arith.constant 0 : index
    %c0_6 = arith.constant 0 : index
    %c0_7 = arith.constant 0 : index
    %c0_8 = arith.constant 0 : index
    %3 = vector.load %arg4[%c0_5, %c0_6, %c0_7, %c0_8] : memref<1x8x8x32xbf16, #tpu.memory_space<vmem>>, vector<1x8x8x32xbf16>
    %4 = vector.shape_cast %3 : vector<1x8x8x32xbf16> to vector<8x8x32xbf16>
    %5 = arith.extf %4 : vector<8x8x32xbf16> to vector<8x8x32xf32>
    %c0_9 = arith.constant 0 : index
    %c0_10 = arith.constant 0 : index
    %c0_11 = arith.constant 0 : index
    %c0_12 = arith.constant 0 : index
    %6 = vector.load %arg5[%c0_9, %c0_10, %c0_11, %c0_12] : memref<1x8x8x32xbf16, #tpu.memory_space<vmem>>, vector<1x8x8x32xbf16>
    %7 = vector.shape_cast %6 : vector<1x8x8x32xbf16> to vector<8x8x32xbf16>
    %8 = tpu.iota {dimensions = array<i32: 2>} : vector<8x8x4xi32>
    %9 = vector.shape_cast %2 : vector<8x8xi32> to vector<8x8x1xi32>
    %10 = vector.broadcast %9 : vector<8x8x1xi32> to vector<8x8x4xi32>
    %11 = arith.cmpi eq, %10, %8 : vector<8x8x4xi32>
    %12 = arith.extui %11 : vector<8x8x4xi1> to vector<8x8x4xi32>
    %13 = arith.sitofp %12 : vector<8x8x4xi32> to vector<8x8x4xf32>
    "tpu.trace_start"() <{level = 10 : i32, message = "bmr,brd->bmd"}> : () -> ()
    %cst = arith.constant dense<0.000000e+00> : vector<8x8x32xf32>
    %14 = tpu.matmul %13, %0, %cst {dimension_numbers = #tpu.dot_dimension_numbers<[2], [1], [1], [2], [0, 0, 0, 1, 1, 2], [0], [0]>} : vector<8x8x4xf32>, vector<8x4x32xf32>, vector<8x8x32xf32> -> vector<8x8x32xf32>
    "tpu.trace_stop"() : () -> ()
    %15 = arith.mulf %5, %14 : vector<8x8x32xf32>
    %cst_13 = arith.constant dense<0.000000e+00> : vector<8x8xf32>
    %16 = vector.multi_reduction <add>, %15, %cst_13 [2] : vector<8x8x32xf32> to vector<8x8xf32>
    %cst_14 = arith.constant dense<0xFF800000> : vector<8xf32>
    %17 = vector.multi_reduction <maximumf>, %16, %cst_14 [1] : vector<8x8xf32> to vector<8xf32>
    %18 = vector.shape_cast %17 : vector<8xf32> to vector<8x1xf32>
    %19 = vector.broadcast %18 : vector<8x1xf32> to vector<8x8xf32>
    %20 = arith.subf %16, %19 : vector<8x8xf32>
    %21 = math.exp %20 : vector<8x8xf32>
    %cst_15 = arith.constant dense<0.000000e+00> : vector<8xf32>
    %22 = vector.multi_reduction <add>, %21, %cst_15 [1] : vector<8x8xf32> to vector<8xf32>
    %23 = vector.shape_cast %22 : vector<8xf32> to vector<8x1xf32>
    %24 = tpu.reciprocal %23 {approx = true} : vector<8x1xf32> -> vector<8x1xf32>
    %25 = vector.broadcast %24 : vector<8x1xf32> to vector<8x8xf32>
    %26 = arith.mulf %21, %25 : vector<8x8xf32>
    %27 = arith.truncf %26 : vector<8x8xf32> to vector<8x8xbf16>
    %28 = vector.shape_cast %27 : vector<8x8xbf16> to vector<8x1x8xbf16>
    "tpu.trace_start"() <{level = 10 : i32, message = "bum,bmd->bud"}> : () -> ()
    %cst_16 = arith.constant dense<0.000000e+00> : vector<8x1x32xf32>
    %29 = tpu.matmul %28, %7, %cst_16 {dimension_numbers = #tpu.dot_dimension_numbers<[2], [1], [1], [2], [0, 0, 0, 1, 1, 2], [0], [0]>} : vector<8x1x8xbf16>, vector<8x8x32xbf16>, vector<8x1x32xf32> -> vector<8x1x32xf32>
    "tpu.trace_stop"() : () -> ()
    %30 = vector.shape_cast %29 : vector<8x1x32xf32> to vector<8x32xf32>
    %c0_17 = arith.constant 0 : index
    %c0_18 = arith.constant 0 : index
    %c0_19 = arith.constant 0 : index
    %31 = vector.load %arg6[%c0_17, %c0_18, %c0_19] : memref<1x8x32xf32, #tpu.memory_space<vmem>>, vector<1x8x32xf32>
    %32 = vector.shape_cast %31 : vector<1x8x32xf32> to vector<8x32xf32>
    %33 = vector.shape_cast %30 : vector<8x32xf32> to vector<1x8x32xf32>
    tpu.vector_store %arg6[%c0_17, %c0_18, %c0_19], %33 {strides = array<i32>} : memref<1x8x32xf32, #tpu.memory_space<vmem>>, vector<1x8x32xf32>,
    return
  }
  func.func @transform_0(%arg0: i32, %arg1: i32) -> (i32, i32, i32) {
    %c0_i32 = arith.constant 0 : i32
    %c0_i32_0 = arith.constant 0 : i32
    %c0_i32_1 = arith.constant 0 : i32
    return %arg0, %c0_i32, %c0_i32_0 : i32, i32, i32
  }
  func.func @transform_1(%arg0: i32, %arg1: i32) -> (i32, i32, i32) {
    %c0_i32 = arith.constant 0 : i32
    %c0_i32_0 = arith.constant 0 : i32
    return %arg1, %arg0, %c0_i32 : i32, i32, i32
  }
  func.func @transform_2(%arg0: i32, %arg1: i32) -> (i32, i32, i32, i32) {
    %c0_i32 = arith.constant 0 : i32
    %c0_i32_0 = arith.constant 0 : i32
    %c0_i32_1 = arith.constant 0 : i32
    return %arg1, %arg0, %c0_i32, %c0_i32_0 : i32, i32, i32, i32
  }
  func.func @transform_3(%arg0: i32, %arg1: i32) -> (i32, i32, i32, i32) {
    %c0_i32 = arith.constant 0 : i32
    %c0_i32_0 = arith.constant 0 : i32
    %c0_i32_1 = arith.constant 0 : i32
    return %arg1, %arg0, %c0_i32, %c0_i32_0 : i32, i32, i32, i32
  }
  func.func @transform_4(%arg0: i32, %arg1: i32) -> (i32, i32, i32) {
    %c0_i32 = arith.constant 0 : i32
    %c0_i32_0 = arith.constant 0 : i32
    return %arg1, %arg0, %c0_i32 : i32, i32, i32
  }
}

</mosaic_0001>

<bundles_post_ra>
// kernel: tpu_custom_call.1
= control target key start
LH: loop header
LB: loop body
LE: loop exit
PB: predicated region body
PF: predicated region fallthrough
CT: control target
= control target key end

     0   :  { %s2038_s0 = inlined_call_operand.hbm [shape: f32[8,4,32], index: 0, kind: input, shape index: {}]   ;;  %s2039_s1 = inlined_call_operand.hbm [shape: s32[2,8,8], index: 1, kind: input, shape index: {}]   ;;  %s2040_s2 = inlined_call_operand.hbm [shape: bf16[2,8,8,32], index: 2, kind: input, shape index: {}]   ;;  %s2041_s3 = inlined_call_operand.hbm [shape: bf16[2,8,8,32], index: 3, kind: input, shape index: {}]   ;;  %s2042_s4 = inlined_call_operand.hbm [shape: f32[2,8,32], index: 4, kind: output, shape index: {}]  }
   0x1   :  { %2048 = sst [smem:[#allocation19_spill]] %s2038_s0 }
   0x2   :  { %2049 = sst [smem:[#allocation20_spill]] %s2039_s1 }
   0x3   :  { %9 = vsyncpa [#allocation3], 0 }
   0x4   :  { %10 = vsyncpa [#allocation6], 0 }
   0x5   :  { %12 = vsyncpa [#allocation6 + $0x1], 0 }
   0x6   :  { %13 = vsyncpa [#allocation9], 0 }
   0x7   :  { %15 = vsyncpa [#allocation9 + $0x1], 0 }
   0x8   :  { %16 = vsyncpa [#allocation4], 0 }
   0x9   :  { %18 = vsyncpa [#allocation4 + $0x1], 0  ;;  %s1714_s15 = smov 0   ;;  %s1716_s16 = smov 0  }
   0xa   :  { %s1718_s17 = smov 0   ;;  %s1720_s18 = smov 0  }
   0xb   :  { %s1722_s19 = smov 0   ;;  %s1724_s20 = smov 0  }
   0xc LB: > { %2050 = sst [smem:[#allocation15_spill]] %s1670_s17  ;;  %s1745_s21 = sadd.s32 4294967295, %s1682_s20   ;;  %s1682_s20 = sphi %s1724_s20, %s24_s20   ;;  %s1678_s19 = sphi %s1722_s19, %s2070_s19   ;;  %s1674_s18 = sphi %s1720_s18, %s2069_s18   ;;  %s1670_s17 = sphi %s1718_s17, %s2065_s17   ;;  %s1666_s16 = sphi %s1716_s16, %s2068_s16   ;;  %s1662_s15 = sphi %s1714_s15, %s2067_s15  }
   0xd   : > { %2051 = sst [smem:[#allocation16_spill]] %s1682_s20  ;;  %s1278_s22 = sadd.s32 4294967294, %s1682_s20  }
   0xe   : > { %s33_s23 = sadd.s32 1, %s1678_s19  ;;  %s71_s24 = sadd.s32 1, %s1670_s17 }
   0xf   : > { %p34_p0 = scmp.ge.s32.totalorder %s33_s23, 2  ;;  %p78_p1 = scmp.ne.s32.totalorder %s1670_s17, %s1666_s16 }
  0x10   : > { %p79_p2 = scmp.eq.s32.totalorder %s1682_s20, 0  ;;  %p84_p3 = scmp.ne.s32.totalorder %s1666_s16, %s1662_s15 }
  0x11   : > { %s2072_s23 = smov (%p34_p0, %s33_s23), 0  ;;  %p166_p5 = scmp.eq.s32.totalorder %s1745_s21, 1 }
  0x12   : > { %2052 = sst [smem:[#allocation17_spill]] %s2072_s23  ;;  %p1757_p4 = por %p79_p2, %p78_p1 }
  0x13   : > { %s66_s26 = ssub.s32 %s1678_s19, %s2072_s23  ;;  %p172_p6 = scmp.eq.s32.totalorder %s1278_s22, 1 }
  0x14   : > { %p69_p7 = scmp.eq.s32.totalorder %s66_s26, 0  ;;  %p1764_p8 = por %p166_p5, %p78_p1 }
  0x15   : > { %p1771_p9 = por %p172_p6, %p84_p3  ;;  %p1281_p10 = scmp.ge.s32.totalorder %s1682_s20, 2 }
  0x16   : > { %s1776_s29 = scalar_select %p69_p7, %s1670_s17, %s71_s24  }
  0x17   : > { %p1392_p11 = scmp.lt.s32.totalorder %s1682_s20, 2  ;;  %s209_s30 = sand.u32 1, %s1682_s20  }
  0x18   : > { %2056 = sst [smem:[#allocation18_spill]] %s1776_s29  ;;  %s1782_s5 = sand.u32 1, %s1670_s17  }
  0x19   : > { %s1282_s6 = sshll.u32 %s1782_s5, 3  ;;  %s1283_s7 = sshll.u32 %s1678_s19, 3 }
  0x1a   : > { %s2057_s1 = sld [smem:[#allocation20_spill]]  ;;  %s213_s11 = scalar_lea.vmem [#allocation5], %s1282_s6 }
  0x1b   : > { %s222_s12 = sshll.u32 %s213_s11, 4  ;;  %p1791_p12 = pnand %p1392_p11, %p1757_p4  ;;  %s223_s12 = int_to_ptr.vmem [resolvable:$true] %s222_s12 }
  0x1c   : > { %s2043_s22 = sshll.u32 %s1782_s5, 5  ;;  %s1340_s24 = sshll.u32 %s1678_s19, 5 }
  0x1d   : > { %s210_s26 = scalar_lea.sflag [#allocation6], %s209_s30  ;;  %s233_s6 = scalar_lea.vmem [#allocation7], %s2043_s22 }
  0x1e   : > { %p85_p13 = scmp.eq.s32.totalorder %s1745_s21, 0  ;;  %p1279_p0 = scmp.ge.s32.totalorder %s1682_s20, 1 }
  0x1f   : > { %p179_p1 = scmp.lt.s32.totalorder %s1682_s20, 3  ;;  %s2059_s0 = sld [smem:[#allocation19_spill]] }
  0x20   : > { %s218_s10 = scalar_lea.hbm %s2057_s1, %s1283_s7  ;;  %s243_s7 = sshll.u32 %s233_s6, 4  ;;  %s244_s7 = int_to_ptr.vmem [resolvable:$true] %s243_s7 }
  0x21   : > { %s220_s13 = sshll.u32 %s218_s10, 4  ;;  %p1812_p2 = por %p85_p13, %p84_p3  ;;  %s221_s13 = int_to_ptr.hbm [resolvable:$true] %s220_s13 }
  0x22   : > { %1380 = dma.hbm_to_vmem [thread:$0]  (!%p1791_p12), %s221_s13, 128, %s223_s12, %s210_s26  }
  0x23   : > { %p1816_p4 = pnand %p1279_p0, %p179_p1  ;;  %s1684_s11 = smov [#allocation2]  }
  0x24   : > { %s195_s12 = sshll.u32 %s1684_s11, 4  ;;  %s240_s25 = scalar_lea.hbm %s2040_s2, %s1340_s24  ;;  %s196_s12 = int_to_ptr.vmem [resolvable:$true] %s195_s12 }
  0x25   : > { %s193_s9 = sshll.u32 %s2059_s0, 4  ;;  %p1373_p5 = pneg %p1816_p4  ;;  %s194_s9 = int_to_ptr.hbm [resolvable:$true] %s193_s9 }
  0x26   : > { %s241_s8 = sshll.u32 %s240_s25, 4  ;;  %s1685_s22 = smov 64   ;;  %s242_s8 = int_to_ptr.hbm [resolvable:$true] %s241_s8 }
  0x27   : > { %p1374_p3 = pnand %p1373_p5, %p85_p13  ;;  %s1686_s0 = smov 4  }
  0x28   : > { %1383 = dma.hbm_to_vmem [thread:$0]  (!%p1791_p12), %s242_s8, 512, %s244_s7, %s210_s26, %s1685_s22, %s1685_s22, %s1686_s0  }
  0x29   : > { %1376 = dma.hbm_to_vmem [thread:$0]  (!%p1374_p3), %s194_s9, 512, %s196_s12, [#allocation3], %s1685_s22, %s1685_s22, %s1686_s0  }
  0x2a   : > { %s264_s23 = scalar_lea.hbm %s2041_s3, %s1340_s24  ;;  %s2062_s29 = sshll.u32 %s1782_s5, 5 }
  0x2b   : > { %s257_s17 = scalar_lea.vmem [#allocation8], %s2062_s29  ;;  %s265_s13 = sshll.u32 %s264_s23, 4  ;;  %s266_s13 = int_to_ptr.hbm [resolvable:$true] %s265_s13 }
  0x2c   : > { %s267_s20 = sshll.u32 %s257_s17, 4  ;;  %s254_s6 = scalar_lea.sflag [#allocation9], %s1782_s5  ;;  %s268_s20 = int_to_ptr.vmem [resolvable:$true] %s267_s20 }
  0x2d   : > { %1386 = dma.hbm_to_vmem [thread:$0]  (!%p1791_p12), %s266_s13, 512, %s268_s20, %s254_s6, %s1685_s22, %s1685_s22, %s1686_s0  }
  0x2e   : > { %279 = sbr.rel (%p1816_p4) target bundleno = 1153 (0x481), region = 36 }
  0x33   : > { %1645 = dma.done.wait (%p85_p13), [#allocation3], 512  }
  0x34   : > { %1647 = vsyncadd (%p85_p13), [#allocation3], 4294966784  ;;  %s286_s1 = sand.u32 1, %s1745_s21   ;;  %s1849_s17 = sand.u32 1, %s1666_s16  }
  0x35   : > { %s1292_s23 = sshll.u32 %s1849_s17, 3  ;;  %s287_s29 = scalar_lea.sflag [#allocation6], %s286_s1 }
  0x36   : > { %s290_s0 = scalar_lea.vmem [#allocation5], %s1292_s23 }
  0x37   : > { %1649 = dma.done.wait (%p1812_p2), %s287_s29, 640  }
  0x38   : > { %1651 = vsyncadd (%p1812_p2), %s287_s29, 4294966656  ;;  %s1293_s20 = sshll.u32 %s1849_s17, 5  ;;  %s307_s21 = scalar_lea.sflag [#allocation9], %s1849_s17 }
  0x39   : > { %s1859_s5 = scalar_lea.vmem [#allocation7], %s1293_s20  ;;  %s1862_s14 = scalar_lea.vmem [#allocation8], %s1293_s20 }
  0x3a   : > { %1653 = dma.done.wait (%p1812_p2), %s307_s21, 512  }
  0x3b   : > { %1655 = vsyncadd (%p1812_p2), %s307_s21, 4294966784  ;;  %v383_v0 = vlaneseq  ;;  %v358_v2 = vld [vmem:[%s290_s0] sm:$0xff]  ;;  %vm469_vm0 = vcmask 1043456   ;;  %v354_v15 = vld [vmem:[#allocation2 + $0x10] sm:$0xf]  ;;  %vm465_vm1 = vcmask 31744  }
  0x3c   : > { %v399_v3 = vperm.slane %v358_v2, 2  ;;  %v385_v4 = vperm.slane %v358_v2, 0  ;;  %v427_v5 = vperm.slane %v358_v2, 6  ;;  %v406_v6 = vperm.slane %v358_v2, 3  ;;  %v352_v11 = vld [vmem:[#allocation2 + $0x8] sm:$0xf] }
  0x3d   : > { %v387_v1 = vshrl.u32 %v383_v0, 7  ;;  %v392_v7 = vperm.slane %v358_v2, 1  ;;  %v434_v8 = vperm.slane %v358_v2, 7  ;;  %v413_v9 = vperm.slane %v358_v2, 4  ;;  %1308 = vmatpush.msk.msra.mxu2 %vm469_vm0, %v352_v11  ;;  %v350_v12 = vld [vmem:[#allocation2] sm:$0xf] }
  0x3e   : > { %v420_v10 = vperm.slane %v358_v2, 5  ;;  %1304 = vmatpush.msk.msra.mxu0 %vm469_vm0, %v350_v12  ;;  %v351_v13 = vld [vmem:[#allocation2 + $0x4] sm:$0xf]  ;;  %v353_v14 = vld [vmem:[#allocation2 + $0xc] sm:$0xf]  ;;  %v1876_v19 = vand.u32 127, %v383_v0 }
  0x3f   : > { %1449 = vset.pattern.permute.xlu1 %v387_v1  ;;  %1448 = vset.pattern.permute.xlu0 %v387_v1  ;;  %v355_v16 = vld [vmem:[#allocation2 + $0x14] sm:$0xf]  ;;  %v356_v17 = vld [vmem:[#allocation2 + $0x18] sm:$0xf]  ;;  %v357_v18 = vld [vmem:[#allocation2 + $0x1c] sm:$0xf] }
  0x40   : > { %1450 = vset.pattern.permute.xlu2 %v387_v1  ;;  %1306 = vmatpush.msk.msra.mxu1 %vm469_vm0, %v351_v13  ;;  %v1687_v23 = vmov 0.0   ;;  %v1343_v37 = vld [vmem:[%s1859_s5] sm:$0xff]   ;;  %v1358_v40 = vld [vmem:[%s1859_s5 + $0x8] sm:$0xff]   ;;  %vm683_vm10 = vcmask 261120   ;;  %v1360_v50 = vld [vmem:[%s1859_s5 + $0x18] sm:$0xff]   ;;  %vm724_vm11 = vcmask 1041409  }
  0x41   : > { %1310 = vmatpush.msk.msra.mxu3 %vm469_vm0, %v353_v14  ;;  %1312 = vmatpush.msk.msrb.mxu0 %vm469_vm0, %v354_v15  ;;  %v1344_v38 = vunpack.c.l.bf16 %v1343_v37  ;;  %v1348_v42 = vunpack.c.l.bf16 %v1358_v40  ;;  %v1345_v44 = vunpack.c.h.bf16 %v1343_v37  ;;  %v1359_v51 = vld [vmem:[%s1859_s5 + $0x10] sm:$0xff]   ;;  %v1349_v53 = vunpack.c.h.bf16 %v1358_v40  ;;  %s1337_s22 = sshll.u32 %s1674_s18, 3  ;;  %s345_s9 = scalar_lea.vmem [#allocation10], %s1292_s23 }
  0x42   : > { %1314 = vmatpush.msk.msrb.mxu1 %vm469_vm0, %v355_v16  ;;  %1316 = vmatpush.msk.msrb.mxu2 %vm469_vm0, %v356_v17  ;;  %v1356_v54 = vunpack.c.l.bf16 %v1360_v50  ;;  %v1353_v55 = vunpack.c.h.bf16 %v1359_v51  ;;  %v1352_v61 = vunpack.c.l.bf16 %v1359_v51  ;;  %vm726_vm12 = vcmask 1042434   ;;  %s1129_s7 = scalar_lea.hbm %s2042_s4, %s1337_s22  ;;  %s1131_s18 = sshll.u32 %s345_s9, 4  ;;  %s1132_s18 = int_to_ptr.vmem [resolvable:$true] %s1131_s18 }
  0x43   : > { %1318 = vmatpush.msk.msrb.mxu3 %vm469_vm0, %v357_v18  ;;  %vm728_vm13 = vcmask 1043459   ;;  %vm730_vm14 = vcmask 1044484   ;;  %vm732_vm15 = vcmask 1045509   ;;  %s1133_s30 = sshll.u32 %s1129_s7, 4  ;;  %s1118_s10 = scalar_lea.sflag [#allocation4], %s1849_s17  ;;  %s1134_s30 = int_to_ptr.hbm [resolvable:$true] %s1133_s30 }
  0x44   : > { %s1606_s12 = sshra.s32 %s1134_s30, 4  ;;  %s1612_s13 = scalar_lea.hbm %s2042_s4, 16  ;;  %s1607_s12 = int_to_ptr.hbm [resolvable:$true] %s1606_s12 }
  0x45   : > { %s1608_s25 = scalar_lea.hbm %s1607_s12, 8  ;;  %p1613_p12 = scmp.lt.s32.totalorder %s1607_s12, %s2042_s4 }
  0x46   : > { %p1609_p6 = scmp.ne.s32.totalorder %s1607_s12, %s1608_s25  ;;  %p1614_p13 = scmp.lt.s32.totalorder %s1612_s13, %s1608_s25 }
  0x47   : > { %404 = vperm.xlu0 %1448, %v399_v3   ;;  %390 = vperm.xlu1 %1449, %v385_v4   ;;  %v1357_v4 = vunpack.c.h.bf16 %v1360_v50 }
  0x48   : > { %432 = vperm.xlu2 %1450, %v427_v5   ;;  %p1610_p7 = pnand %p1609_p6, %p1764_p8  ;;  %p1615_p0 = por %p1614_p13, %p1613_p12 }
  0x4a   : > { %p1611_p11 = pneg %p1610_p7 }
  0x4c   : > { %p1616_p1 = pnand %p1615_p0, %p1611_p11 }
  0x4f   : > { %411 = vperm.xlu0 %1448, %v406_v6   ;;  %397 = vperm.xlu1 %1449, %v392_v7  }
  0x50   : > { %439 = vperm.xlu2 %1450, %v434_v8  }
  0x57   : > { %418 = vperm.xlu0 %1448, %v413_v9   ;;  %425 = vperm.xlu1 %1449, %v420_v10  }
  0xa2   : > { %v433_v22 = vpop.permute.xlu2 %432 }
  0xa3   : > { %vm447_vm4 = vcmp.eq.s32.totalorder %v433_v22, %v1876_v19 }
  0xa4   : > { %v1302_v28 = vsel %vm447_vm4, 1.0, %v1687_v23 }
  0xaa   : > { %v440_v31 = vpop.permute.xlu2 %439 }
  0xab   : > { %vm448_vm7 = vcmp.eq.s32.totalorder %v440_v31, %v1876_v19 }
  0xac   : > { %v1303_v34 = vsel %vm448_vm7, 1.0, %v1687_v23 }
  0xb9   : > { %v405_v20 = vpop.permute.xlu0 %404  ;;  %v391_v21 = vpop.permute.xlu1 %390 }
  0xba   : > { %vm443_vm2 = vcmp.eq.s32.totalorder %v405_v20, %v1876_v19  ;;  %vm441_vm3 = vcmp.eq.s32.totalorder %v391_v21, %v1876_v19 }
  0xbb   : > { %v1298_v24 = vsel %vm443_vm2, 1.0, %v1687_v23  ;;  %v1296_v25 = vsel %vm441_vm3, 1.0, %v1687_v23  ;;  %vm736_vm2 = vcmask 1047559   ;;  %vm739_vm3 = vcmask 64512  }
  0xbc   : > { %1309 = vmatmul.msk.f32.vlgmr.msra.gmra.mxu2 %vm465_vm1, %v1298_v24  ;;  %1305 = vmatmul.msk.f32.vlgmr.msra.gmra.mxu0 %vm465_vm1, %v1296_v25 }
  0xc1   : > { %v412_v26 = vpop.permute.xlu0 %411  ;;  %v398_v27 = vpop.permute.xlu1 %397 }
  0xc2   : > { %vm444_vm5 = vcmp.eq.s32.totalorder %v412_v26, %v1876_v19  ;;  %vm442_vm6 = vcmp.eq.s32.totalorder %v398_v27, %v1876_v19 }
  0xc3   : > { %v1299_v29 = vsel %vm444_vm5, 1.0, %v1687_v23  ;;  %v1297_v30 = vsel %vm442_vm6, 1.0, %v1687_v23 }
  0xc4   : > { %1307 = vmatmul.msk.f32.vlgmr.msra.gmra.mxu1 %vm465_vm1, %v1297_v30  ;;  %1311 = vmatmul.msk.f32.vlgmr.msra.gmra.mxu3 %vm465_vm1, %v1299_v29 }
  0xc5   : > { %1317 = vmatmul.msk.f32.vlgmr.msrb.gmra.mxu2 %vm465_vm1, %v1302_v28 }
  0xc9   : > { %v419_v32 = vpop.permute.xlu0 %418  ;;  %v426_v33 = vpop.permute.xlu1 %425 }
  0xca   : > { %vm445_vm8 = vcmp.eq.s32.totalorder %v419_v32, %v1876_v19  ;;  %vm446_vm9 = vcmp.eq.s32.totalorder %v426_v33, %v1876_v19 }
  0xcb   : > { %v1300_v35 = vsel %vm445_vm8, 1.0, %v1687_v23  ;;  %v1301_v36 = vsel %vm446_vm9, 1.0, %v1687_v23 }
  0xcc   : > { %1313 = vmatmul.msk.f32.vlgmr.msrb.gmra.mxu0 %vm465_vm1, %v1300_v35  ;;  %1315 = vmatmul.msk.f32.vlgmr.msrb.gmra.mxu1 %vm465_vm1, %v1301_v36 }
  0xcd   : > { %1319 = vmatmul.msk.f32.vlgmr.msrb.gmra.mxu3 %vm465_vm1, %v1303_v34  ;;  %vm734_vm1 = vcmask 1046534   ;;  %v1688_v34 = vmov 0  }
  0xce   : > { %1452 = vset.pattern.permute.xlu2 %v1688_v34  ;;  %1453 = vset.pattern.permute.xlu0 %v1688_v34 }
  0xcf   : > { %1451 = vset.pattern.permute.xlu1 %v1688_v34 }
 0x139   : > { %v490_v39 = vpop.f32.mrf.mxu0 }
 0x13a   : > { %v675_v41 = vmul.f32 %v1344_v38, %v490_v39 }
 0x13c   : > { %v684_v43 = vsel %vm683_vm10, %v675_v41, 0.0 }
 0x13d   : > { %685 = vadd.xlane.f32.xlu2 %v684_v43 }
 0x13f   : > { %v542_v45 = vpop.f32.mrf.mxu2 }
 0x140   : > { %v677_v46 = vmul.f32 %v1348_v42, %v542_v45 }
 0x141   : > { %v516_v47 = vpop.f32.mrf.mxu1 }
 0x142   : > { %v676_v48 = vmul.f32 %v1345_v44, %v516_v47  ;;  %v690_v49 = vsel %vm683_vm10, %v677_v46, 0.0 }
 0x143   : > { %691 = vadd.xlane.f32.xlu1 %v690_v49 }
 0x144   : > { %v687_v52 = vsel %vm683_vm10, %v676_v48, 0.0 }
 0x145   : > { %688 = vadd.xlane.f32.xlu0 %v687_v52 }
 0x147   : > { %v568_v56 = vpop.f32.mrf.mxu3 }
 0x148   : > { %v678_v57 = vmul.f32 %v1349_v53, %v568_v56  ;;  %v646_v58 = vpop.f32.mrf.mxu2 }
 0x149   : > { %v620_v59 = vpop.f32.mrf.mxu1  ;;  %v681_v60 = vmul.f32 %v1356_v54, %v646_v58  ;;  %v594_v0 = vpop.f32.mrf.mxu0 }
 0x14a   : > { %v680_v62 = vmul.f32 %v1353_v55, %v620_v59  ;;  %v693_v63 = vsel %vm683_vm10, %v678_v57, 0.0  ;;  %v679_v3 = vmul.f32 %v1352_v61, %v594_v0 }
 0x14b   : > { %694 = vadd.xlane.f32.xlu2 %v693_v63  ;;  %v702_v1 = vsel %vm683_vm10, %v681_v60, 0.0 }
 0x14c   : > { %v699_v2 = vsel %vm683_vm10, %v680_v62, 0.0  ;;  %703 = vadd.xlane.f32.xlu1 %v702_v1  ;;  %v696_v5 = vsel %vm683_vm10, %v679_v3, 0.0 }
 0x14d   : > { %700 = vadd.xlane.f32.xlu0 %v699_v2 }
 0x150   : > { %v672_v6 = vpop.f32.mrf.mxu3 }
 0x151   : > { %v682_v7 = vmul.f32 %v1357_v4, %v672_v6 }
 0x153   : > { %697 = vadd.xlane.f32.xlu2 %v696_v5  ;;  %v705_v8 = vsel %vm683_vm10, %v682_v7, 0.0 }
 0x15b   : > { %706 = vadd.xlane.f32.xlu2 %v705_v8 }
 0x1b0   : > { %v686_v9 = vpop.xlane.xlu2 %685 }
 0x1b1   : > { %v716_v14 = vperm.slane %v686_v9, %v1876_v19 }
 0x1b6   : > { %v692_v13 = vpop.xlane.xlu1 %691 }
 0x1b7   : > { %v718_v17 = vperm.slane %v692_v13, %v1876_v19 }
 0x1b8   : > { %v689_v10 = vpop.xlane.xlu0 %688 }
 0x1b9   : > { %v717_v12 = vperm.slane %v689_v10, %v1876_v19 }
 0x1bb   : > { %v725_v15 = vsel %vm724_vm11, %v717_v12, %v716_v14 }
 0x1bc   : > { %v727_v21 = vsel %vm726_vm12, %v718_v17, %v725_v15 }
 0x1be   : > { %v695_v11 = vpop.xlane.xlu2 %694 }
 0x1bf   : > { %v719_v16 = vperm.slane %v695_v11, %v1876_v19  ;;  %v704_v26 = vpop.xlane.xlu1 %703 }
 0x1c0   : > { %v701_v22 = vpop.xlane.xlu0 %700  ;;  %v722_v28 = vperm.slane %v704_v26, %v1876_v19 }
 0x1c1   : > { %v729_v23 = vsel %vm728_vm13, %v719_v16, %v727_v21  ;;  %v721_v25 = vperm.slane %v701_v22, %v1876_v19 }
 0x1c6   : > { %v698_v18 = vpop.xlane.xlu2 %697 }
 0x1c7   : > { %v720_v20 = vperm.slane %v698_v18, %v1876_v19 }
 0x1c9   : > { %v731_v24 = vsel %vm730_vm14, %v720_v20, %v729_v23 }
 0x1ca   : > { %v733_v27 = vsel %vm732_vm15, %v721_v25, %v731_v24 }
 0x1cb   : > { %v735_v31 = vsel %vm734_vm1, %v722_v28, %v733_v27 }
 0x1ce   : > { %v707_v29 = vpop.xlane.xlu2 %706 }
 0x1cf   : > { %v723_v30 = vperm.slane %v707_v29, %v1876_v19 }
 0x1d1   : > { %v737_v32 = vsel %vm736_vm2, %v723_v30, %v735_v31 }
 0x1d2   : > { %v740_v33 = vsel %vm739_vm3, %v737_v32, -inf }
 0x1d3   : > { %741 = vmax.xlane.f32.xlu0 %v740_v33 }
 0x246   : > { %v742_v35 = vpop.xlane.xlu0 %741 }
 0x247   : > { %v746_v36 = vperm.slane %v742_v35, 2  ;;  %v745_v37 = vperm.slane %v742_v35, 1  ;;  %v744_v38 = vperm.slane %v742_v35, 0  ;;  %v748_v42 = vperm.slane %v742_v35, 4 }
 0x248   : > { %v747_v43 = vperm.slane %v742_v35, 3  ;;  %v750_v50 = vperm.slane %v742_v35, 6  ;;  %v749_v53 = vperm.slane %v742_v35, 5  ;;  %v751_v60 = vperm.slane %v742_v35, 7 }
 0x249   : > { %v762_v39 = vsub.f32 %v692_v13, %v746_v36  ;;  %v761_v40 = vsub.f32 %v689_v10, %v745_v37  ;;  %v760_v41 = vsub.f32 %v686_v9, %v744_v38  ;;  %v764_v47 = vsub.f32 %v698_v18, %v748_v42 }
 0x24a   : > { %v763_v48 = vsub.f32 %v695_v11, %v747_v43  ;;  %v766_v56 = vsub.f32 %v704_v26, %v750_v50  ;;  %v765_v57 = vsub.f32 %v701_v22, %v749_v53  ;;  %v767_v63 = vsub.f32 %v707_v29, %v751_v60 }
 0x24b   : > { %v772_v44 = vmul.f32 1.442695, %v762_v39  ;;  %v770_v45 = vmul.f32 1.442695, %v761_v40  ;;  %v768_v46 = vmul.f32 1.442695, %v760_v41 }
 0x24c   : > { %v776_v49 = vmul.f32 1.442695, %v764_v47  ;;  %v774_v52 = vmul.f32 1.442695, %v763_v48  ;;  %v780_v58 = vmul.f32 1.442695, %v766_v56 }
 0x24d   : > { %1454 = vpow2.f32 %v772_v44  ;;  %v778_v59 = vmul.f32 1.442695, %v765_v57  ;;  %v782_v0 = vmul.f32 1.442695, %v767_v63 }
 0x24e   : > { %1456 = vpow2.f32 %v770_v45  ;;  %v377_v45 = vld [vmem:[%s1862_s14 + $0x8] sm:$0xf] }
 0x24f   : > { %1458 = vpow2.f32 %v768_v46  ;;  %v378_v46 = vld [vmem:[%s1862_s14 + $0xc] sm:$0xf] }
 0x250   : > { %1460 = vpow2.f32 %v776_v49 }
 0x251   : > { %1462 = vpow2.f32 %v774_v52  ;;  %v938_v52 = vsel %vm469_vm0, %v377_v45, 0 }
 0x252   : > { %1464 = vpow2.f32 %v780_v58  ;;  %947 = vmatpush.bf16.msra.mxu2 %v938_v52 }
 0x253   : > { %v1922_v51 = vpop.eup %1454  ;;  %1466 = vpow2.f32 %v778_v59 }
 0x254   : > { %v1924_v54 = vpop.eup %1456  ;;  %799 = vperm.xlu0 %1453, %v1922_v51   ;;  %1468 = vpow2.f32 %v782_v0 }
 0x255   : > { %v1459_v55 = vpop.eup %1458  ;;  %796 = vperm.xlu2 %1452, %v1924_v54  }
 0x256   : > { %793 = vperm.xlu1 %1451, %v1459_v55   ;;  %v1928_v61 = vpop.eup %1460 }
 0x257   : > { %v1463_v62 = vpop.eup %1462 }
 0x258   : > { %v1931_v1 = vpop.eup %1464 }
 0x259   : > { %v1933_v2 = vpop.eup %1466 }
 0x25a   : > { %v1469_v3 = vpop.eup %1468 }
 0x25d   : > { %805 = vperm.xlu2 %1452, %v1928_v61  }
 0x25e   : > { %802 = vperm.xlu1 %1451, %v1463_v62  }
 0x265   : > { %811 = vperm.xlu2 %1452, %v1931_v1  }
 0x266   : > { %808 = vperm.xlu1 %1451, %v1933_v2  }
 0x26e   : > { %814 = vperm.xlu1 %1451, %v1469_v3  }
 0x2af   : > { %v797_v5 = vpop.permute.xlu2 %796 }
 0x2b0   : > { %v817_v10 = vperm.slane %v797_v5, %v1876_v19 }
 0x2b7   : > { %v806_v7 = vpop.permute.xlu2 %805 }
 0x2b8   : > { %v820_v18 = vperm.slane %v806_v7, %v1876_v19 }
 0x2bf   : > { %v812_v20 = vpop.permute.xlu2 %811 }
 0x2c0   : > { %v822_v23 = vperm.slane %v812_v20, %v1876_v19  ;;  %v379_v20 = vld [vmem:[%s1862_s14 + $0x10] sm:$0xf] }
 0x2c6   : > { %v800_v8 = vpop.permute.xlu0 %799 }
 0x2c7   : > { %v818_v11 = vperm.slane %v800_v8, %v1876_v19 }
 0x2c8   : > { %v794_v4 = vpop.permute.xlu1 %793 }
 0x2c9   : > { %v816_v9 = vperm.slane %v794_v4, %v1876_v19 }
 0x2cb   : > { %v824_v12 = vsel %vm724_vm11, %v817_v10, %v816_v9 }
 0x2cc   : > { %v825_v15 = vsel %vm726_vm12, %v818_v11, %v824_v12 }
 0x2d0   : > { %v803_v6 = vpop.permute.xlu1 %802 }
 0x2d1   : > { %v819_v13 = vperm.slane %v803_v6, %v1876_v19 }
 0x2d3   : > { %v826_v16 = vsel %vm728_vm13, %v819_v13, %v825_v15  ;;  %v375_v13 = vld [vmem:[%s1862_s14] sm:$0xf]  ;;  %v381_v15 = vld [vmem:[%s1862_s14 + $0x18] sm:$0xf] }
 0x2d4   : > { %v827_v21 = vsel %vm730_vm14, %v820_v18, %v826_v16  ;;  %v382_v16 = vld [vmem:[%s1862_s14 + $0x1c] sm:$0xf] }
 0x2d5   : > { %v1078_v18 = vsel %vm469_vm0, %v382_v16, 0 }
 0x2d8   : > { %v809_v14 = vpop.permute.xlu1 %808 }
 0x2d9   : > { %v821_v17 = vperm.slane %v809_v14, %v1876_v19 }
 0x2db   : > { %v828_v22 = vsel %vm732_vm15, %v821_v17, %v827_v21  ;;  %v1050_v17 = vsel %vm469_vm0, %v381_v15, 0  ;;  %v380_v21 = vld [vmem:[%s1862_s14 + $0x14] sm:$0xf] }
 0x2dc   : > { %v829_v26 = vsel %vm734_vm1, %v822_v23, %v828_v22  ;;  %1059 = vmatpush.bf16.msrb.mxu2 %v1050_v17  ;;  %v994_v22 = vsel %vm469_vm0, %v379_v20, 0  ;;  %v1022_v23 = vsel %vm469_vm0, %v380_v21, 0 }
 0x2e0   : > { %v815_v24 = vpop.permute.xlu1 %814 }
 0x2e1   : > { %v823_v25 = vperm.slane %v815_v24, %v1876_v19 }
 0x2e3   : > { %v830_v27 = vsel %vm736_vm2, %v823_v25, %v829_v26 }
 0x2e4   : > { %v832_v28 = vsel %vm739_vm3, %v830_v27, 0.0 }
 0x2e5   : > { %833 = vadd.xlane.f32.xlu2 %v832_v28 }
 0x358   : > { %v834_v29 = vpop.xlane.xlu2 %833 }
 0x359   : > { %1470 = vrcp.f32 %v834_v29 }
 0x35f   : > { %v1471_v30 = vpop.eup %1470 }
 0x360   : > { %v840_v31 = vperm.slane %v1471_v30, 3  ;;  %v839_v32 = vperm.slane %v1471_v30, 2  ;;  %v838_v33 = vperm.slane %v1471_v30, 1  ;;  %v837_v34 = vperm.slane %v1471_v30, 0 }
 0x361   : > { %v844_v43 = vperm.slane %v1471_v30, 7  ;;  %v843_v44 = vperm.slane %v1471_v30, 6  ;;  %v842_v57 = vperm.slane %v1471_v30, 5  ;;  %v841_v58 = vperm.slane %v1471_v30, 4 }
 0x362   : > { %v856_v35 = vmul.f32 %v1463_v62, %v840_v31  ;;  %v855_v36 = vmul.f32 %v1922_v51, %v839_v32  ;;  %v854_v39 = vmul.f32 %v1924_v54, %v838_v33  ;;  %v853_v40 = vmul.f32 %v1459_v55, %v837_v34 }
 0x363   : > { %v966_v51 = vsel %vm469_vm0, %v378_v46, 0  ;;  %v860_v55 = vmul.f32 %v1469_v3, %v844_v43  ;;  %v859_v56 = vmul.f32 %v1931_v1, %v843_v44  ;;  %v858_v5 = vmul.f32 %v1933_v2, %v842_v57  ;;  %v376_v2 = vld [vmem:[%s1862_s14 + $0x4] sm:$0xf] }
 0x364   : > { %v864_v37 = vpack.c.bf16 %v856_v35, %v856_v35  ;;  %v863_v38 = vpack.c.bf16 %v855_v36, %v855_v36  ;;  %v862_v49 = vpack.c.bf16 %v854_v39, %v854_v39  ;;  %v861_v50 = vpack.c.bf16 %v853_v40, %v853_v40  ;;  %975 = vmatpush.bf16.msra.mxu3 %v966_v51 }
 0x365   : > { %v868_v62 = vpack.c.bf16 %v860_v55, %v860_v55  ;;  %v867_v63 = vpack.c.bf16 %v859_v56, %v859_v56  ;;  %v857_v6 = vmul.f32 %v1928_v61, %v841_v58  ;;  %v866_v8 = vpack.c.bf16 %v858_v5, %v858_v5 }
 0x366   : > { %v954_v41 = vunpack.c.l.b16 %v864_v37  ;;  %v926_v42 = vunpack.c.l.b16 %v863_v38  ;;  %v898_v53 = vunpack.c.l.b16 %v862_v49  ;;  %v870_v54 = vunpack.c.l.b16 %v861_v50 }
 0x367   : > { %v1066_v0 = vunpack.c.l.b16 %v868_v62  ;;  %v1038_v4 = vunpack.c.l.b16 %v867_v63  ;;  %v865_v1 = vpack.c.bf16 %v857_v6, %v857_v6  ;;  %v1010_v9 = vunpack.c.l.b16 %v866_v8 }
 0x368   : > { %v1326_v47 = vunpack.i.l.s16 %v954_v41  ;;  %v1324_v48 = vunpack.i.l.s16 %v926_v42  ;;  %v1322_v59 = vunpack.i.l.s16 %v898_v53  ;;  %v1320_v60 = vunpack.i.l.s16 %v870_v54  ;;  %1087 = vmatpush.bf16.msrb.mxu3 %v1078_v18 }
 0x369   : > { %v1334_v7 = vunpack.i.l.s16 %v1066_v0  ;;  %v1332_v3 = vunpack.i.l.s16 %v1038_v4  ;;  %v982_v10 = vunpack.c.l.b16 %v865_v1  ;;  %v1330_v11 = vunpack.i.l.s16 %v1010_v9 }
 0x36a   : > { %958 = vperm.xlu1 %1451, %v1326_v47   ;;  %930 = vperm.xlu0 %1453, %v1324_v48   ;;  %v882_v61 = vsel %vm469_vm0, %v375_v13, 0  ;;  %v910_v14 = vsel %vm469_vm0, %v376_v2, 0 }
 0x36b   : > { %v1328_v12 = vunpack.i.l.s16 %v982_v10  ;;  %891 = vmatpush.bf16.msra.mxu0 %v882_v61  ;;  %919 = vmatpush.bf16.msra.mxu1 %v910_v14 }
 0x36f   : > { %1003 = vmatpush.bf16.msrb.mxu0 %v994_v22  ;;  %1031 = vmatpush.bf16.msrb.mxu1 %v1022_v23 }
 0x372   : > { %902 = vperm.xlu1 %1451, %v1322_v59   ;;  %874 = vperm.xlu0 %1453, %v1320_v60  }
 0x37a   : > { %1070 = vperm.xlu1 %1451, %v1334_v7   ;;  %1042 = vperm.xlu0 %1453, %v1332_v3  }
 0x382   : > { %1014 = vperm.xlu1 %1451, %v1330_v11   ;;  %986 = vperm.xlu0 %1453, %v1328_v12  }
 0x3dc   : > { %v959_v24 = vpop.permute.xlu1 %958  ;;  %v931_v25 = vpop.permute.xlu0 %930 }
 0x3dd   : > { %v960_v26 = vperm.slane %v959_v24, %v1876_v19  ;;  %v932_v27 = vperm.slane %v931_v25, %v1876_v19 }
 0x3df   : > { %v961_v28 = vpack.c.b16 %v960_v26, %v960_v26  ;;  %v933_v29 = vpack.c.b16 %v932_v27, %v932_v27 }
 0x3e1   : > { %1325 = vmatmul.msk.bf16.vlgmr.msra.gmra.mxu2 %vm739_vm3, %v933_v29  ;;  %1327 = vmatmul.msk.bf16.vlgmr.msra.gmra.mxu3 %vm739_vm3, %v961_v28 }
 0x3e4   : > { %v903_v30 = vpop.permute.xlu1 %902  ;;  %v875_v31 = vpop.permute.xlu0 %874 }
 0x3e5   : > { %v904_v32 = vperm.slane %v903_v30, %v1876_v19  ;;  %v876_v33 = vperm.slane %v875_v31, %v1876_v19 }
 0x3e7   : > { %v905_v34 = vpack.c.b16 %v904_v32, %v904_v32  ;;  %v877_v35 = vpack.c.b16 %v876_v33, %v876_v33 }
 0x3e9   : > { %1321 = vmatmul.msk.bf16.vlgmr.msra.gmra.mxu0 %vm739_vm3, %v877_v35  ;;  %1323 = vmatmul.msk.bf16.vlgmr.msra.gmra.mxu1 %vm739_vm3, %v905_v34 }
 0x3ec   : > { %v1071_v36 = vpop.permute.xlu1 %1070  ;;  %v1043_v37 = vpop.permute.xlu0 %1042 }
 0x3ed   : > { %v1072_v38 = vperm.slane %v1071_v36, %v1876_v19  ;;  %v1044_v39 = vperm.slane %v1043_v37, %v1876_v19 }
 0x3ef   : > { %v1073_v40 = vpack.c.b16 %v1072_v38, %v1072_v38  ;;  %v1045_v41 = vpack.c.b16 %v1044_v39, %v1044_v39 }
 0x3f1   : > { %1333 = vmatmul.msk.bf16.vlgmr.msrb.gmra.mxu2 %vm739_vm3, %v1045_v41  ;;  %1335 = vmatmul.msk.bf16.vlgmr.msrb.gmra.mxu3 %vm739_vm3, %v1073_v40 }
 0x3f4   : > { %v1015_v42 = vpop.permute.xlu1 %1014  ;;  %v987_v43 = vpop.permute.xlu0 %986 }
 0x3f5   : > { %v1016_v44 = vperm.slane %v1015_v42, %v1876_v19  ;;  %v988_v45 = vperm.slane %v987_v43, %v1876_v19 }
 0x3f7   : > { %v1017_v46 = vpack.c.b16 %v1016_v44, %v1016_v44  ;;  %v989_v47 = vpack.c.b16 %v988_v45, %v988_v45 }
 0x3f9   : > { %1329 = vmatmul.msk.bf16.vlgmr.msrb.gmra.mxu0 %vm739_vm3, %v989_v47  ;;  %1331 = vmatmul.msk.bf16.vlgmr.msrb.gmra.mxu1 %vm739_vm3, %v1017_v46 }
 0x464   : > { %v949_v48 = vpop.f32.mrf.mxu2  ;;  %v977_v49 = vpop.f32.mrf.mxu3 }
 0x465   : > { %v1103_v19 = vrot.slane %v949_v48, 6  ;;  %v1105_v62 = vrot.slane %v977_v49, 5 }
 0x466   : > { %v893_v50 = vpop.f32.mrf.mxu0  ;;  %v921_v52 = vpop.f32.mrf.mxu1 }
 0x467   : > { %v1101_v54 = vrot.slane %v921_v52, 7 }
 0x469   : > { %v1102_v57 = vsel %vm724_vm11, %v1101_v54, %v893_v50 }
 0x46a   : > { %v1104_v60 = vsel %vm726_vm12, %v1103_v19, %v1102_v57 }
 0x46b   : > { %v1106_v6 = vsel %vm728_vm13, %v1105_v62, %v1104_v60 }
 0x46c   : > { %v951_v51 = vpop.f32.mrf.mxu2  ;;  %v979_v53 = vpop.f32.mrf.mxu3 }
 0x46e   : > { %v895_v55 = vpop.f32.mrf.mxu0  ;;  %v923_v56 = vpop.f32.mrf.mxu1 }
 0x474   : > { %v1061_v58 = vpop.f32.mrf.mxu2  ;;  %v1089_v59 = vpop.f32.mrf.mxu3 }
 0x475   : > { %v1111_v7 = vrot.slane %v1061_v58, 2  ;;  %v1113_v8 = vrot.slane %v1089_v59, 1 }
 0x476   : > { %v1005_v63 = vpop.f32.mrf.mxu0  ;;  %v1033_v0 = vpop.f32.mrf.mxu1 }
 0x477   : > { %v1107_v4 = vrot.slane %v1005_v63, 4  ;;  %v1109_v5 = vrot.slane %v1033_v0, 3 }
 0x479   : > { %v1108_v3 = vsel %vm730_vm14, %v1107_v4, %v1106_v6 }
 0x47a   : > { %v1110_v1 = vsel %vm732_vm15, %v1109_v5, %v1108_v3 }
 0x47b   : > { %v1112_v9 = vsel %vm734_vm1, %v1111_v7, %v1110_v1 }
 0x47c   : > { %v1114_v10 = vsel %vm736_vm2, %v1113_v8, %v1112_v9  ;;  %v1063_v11 = vpop.f32.mrf.mxu2  ;;  %v1091_v12 = vpop.f32.mrf.mxu3 }
 0x47d   : > { %1116 = vst.msk [vmem:[%s345_s9] sm:$0xff] %vm683_vm10, %v1114_v10 }
 0x47e   : > { %v1007_v13 = vpop.f32.mrf.mxu0  ;;  %v1035_v2 = vpop.f32.mrf.mxu1 }
 0x47f   : > { %1619 = shalt.err (!%p1616_p1)
}
 0x480   : > { %1371 = dma.vmem_to_hbm [thread:$0]  (%p1764_p8), %s1132_s18, 128, %s1134_s30, %s1118_s10  }
 0x481 PF: > { %s2063_s17 = sld [smem:[#allocation16_spill]]  ;;  %s1145_s23 = sand.u32 1, %s1662_s15  }
 0x482   : > { %p1388_p2 = pnand %p1281_p10, %p1771_p9  ;;  %s1146_s29 = scalar_lea.sflag [#allocation4], %s1145_s23 }
 0x484   : > { %p1389_p4 = pneg %p1388_p2 }
 0x486   : > { %1657 = dma.done.wait (%p1389_p4), %s1146_s29, 128  }
 0x487   : > { %1659 = vsyncadd (%p1389_p4), %s1146_s29, 4294967168  ;;  %s24_s20 = sadd.s32 1, %s2063_s17   ;;  %s2064_s0 = sld [smem:[#allocation15_spill]] }
 0x488   : > { %p21_p5 = scmp.ge.s32.totalorder %s24_s20, 4   ;;  %s2065_s17 = sld [smem:[#allocation18_spill]] }
 0x489   : > { %s2066_s27 = sld [smem:[#allocation17_spill]]  ;;  %s2067_s15 = smov %s1666_s16 }
 0x48a   : > { %s2069_s18 = smov %s1678_s19 }
 0x48b   :  { %23 = sbr.rel (!%p21_p5) target bundleno = 12 (0xc), region = 111 }
 0x48d   : > { %s2068_s16 = smov %s2064_s0 }
 0x48f   : > { %s2070_s19 = smov %s2066_s27 }
 0x490   :  { %1152 = vsyncpa [#allocation3], 1 }
 0x491   :  { %1154 = vsyncpa [#allocation3 + $0x1], 1 }
 0x492   :  { %1155 = vsyncpa [#allocation6], 1 }
 0x493   :  { %1157 = vsyncpa [#allocation6 + $0x1], 1 }
 0x494   :  { %1158 = vsyncpa [#allocation9], 1 }
 0x495   :  { %1160 = vsyncpa [#allocation9 + $0x1], 1 }
 0x496   :  { %1161 = vsyncpa [#allocation4], 1 }
 0x497   :  { %1163 = vsyncpa [#allocation4 + $0x1], 1 }

</bundles_post_ra>
